<compile_context>
chip_gen: v7x
topology: tpu7x:2x2x1
jax: 0.10.0
libtpu: 0.0.40
codegen_flags: <defaults>
</compile_context>

<pallas_src>
import functools

import jax
import jax.numpy as jnp
from jax.experimental import pallas as pl
from jax.experimental.pallas import tpu as pltpu

EPS = 1e-5


def _fc_embedding_kernel(
    # ---- inputs (order matches the pallas_call operands) -------------------
    x_ref,                      # (tile_n, data_dim)  streamed tile of x
    g1_ref, b1_ref,             # (1, data_dim)       BatchNorm1d(data_dim) gamma/beta
    w1_ref, bias1_ref,          # (data_dim, state_dim), (1, state_dim)  Linear 1
    g2_ref, b2_ref,             # (1, state_dim)      BatchNorm1d(state_dim) gamma/beta
    w2_ref, bias2_ref,          # (state_dim, state_dim), (1, state_dim) Linear 2
    # ---- output -------------------------------------------------------------
    o_ref,                      # (tile_n, state_dim)
    # ---- VMEM scratch (persists across the whole grid) ----------------------
    sum1_ref, sumsq1_ref,       # (1, data_dim)   running sum / sum-of-squares of x
    sum2_ref, sumsq2_ref,       # (1, state_dim)  running sum / sum-of-squares of h
    scale1_ref, b1eff_ref,      # folded BN1 scale, effective Linear-1 bias
    scale2_ref, b2eff_ref,      # folded BN2 scale, effective Linear-2 bias
    *, inv_n,
):
    phase = pl.program_id(0)
    tile = pl.program_id(1)
    last_tile = pl.num_programs(1) - 1

    x = x_ref[...]              # f32 (tile_n, data_dim)

    def hidden():
        # h = relu(bn1(x) @ W1 + bias1) with BN1 folded into (scale1, b1eff).
        pre = jnp.dot(x * scale1_ref[...], w1_ref[...],
                      preferred_element_type=jnp.float32) + b1eff_ref[...]
        return jnp.maximum(pre, 0.0)

    # ---------------- phase 0: batch stats of x, then fold BN1 ----------------
    @pl.when(phase == 0)
    def _():
        @pl.when(tile == 0)
        def _():
            sum1_ref[...] = jnp.zeros_like(sum1_ref)
            sumsq1_ref[...] = jnp.zeros_like(sumsq1_ref)

        # one-pass sum / sum-of-squares (sublane reduction -> XLU)
        sum1_ref[...] += jnp.sum(x, axis=0, keepdims=True)
        sumsq1_ref[...] += jnp.sum(x * x, axis=0, keepdims=True)

        @pl.when(tile == last_tile)
        def _():
            mean1 = sum1_ref[...] * inv_n
            var1 = sumsq1_ref[...] * inv_n - mean1 * mean1      # biased variance
            sc1 = g1_ref[...] * jax.lax.rsqrt(var1 + EPS)
            scale1_ref[...] = sc1
            shift1 = b1_ref[...] - mean1 * sc1                  # (1, data_dim)
            b1eff_ref[...] = (
                jnp.dot(shift1, w1_ref[...], preferred_element_type=jnp.float32)
                + bias1_ref[...])

    # ---------------- phase 1: batch stats of h, then fold BN2 ----------------
    @pl.when(phase == 1)
    def _():
        @pl.when(tile == 0)
        def _():
            sum2_ref[...] = jnp.zeros_like(sum2_ref)
            sumsq2_ref[...] = jnp.zeros_like(sumsq2_ref)

        h = hidden()
        sum2_ref[...] += jnp.sum(h, axis=0, keepdims=True)
        sumsq2_ref[...] += jnp.sum(h * h, axis=0, keepdims=True)

        @pl.when(tile == last_tile)
        def _():
            mean2 = sum2_ref[...] * inv_n
            var2 = sumsq2_ref[...] * inv_n - mean2 * mean2
            sc2 = g2_ref[...] * jax.lax.rsqrt(var2 + EPS)
            scale2_ref[...] = sc2
            shift2 = b2_ref[...] - mean2 * sc2                  # (1, state_dim)
            b2eff_ref[...] = (
                jnp.dot(shift2, w2_ref[...], preferred_element_type=jnp.float32)
                + bias2_ref[...])

    # ---------------- phase 2: produce the output tiles ------------------------
    @pl.when(phase == 2)
    def _():
        h = hidden()
        out = jnp.dot(h * scale2_ref[...], w2_ref[...],
                      preferred_element_type=jnp.float32) + b2eff_ref[...]
        o_ref[...] = out.astype(o_ref.dtype)


def _choose_tile_n(n, cap=2048):
    """Largest multiple-of-8 divisor of n not exceeding `cap`; fall back to n."""
    for t in range(min(n, cap), 7, -1):
        if n % t == 0 and t % 8 == 0:
            return t
    return n


def fully_connected_embedding(x, params, *, tile_n=None):
    """x: (bs, gd, data_dim) float32 -> (bs, gd, state_dim) float32."""
    bs, gd, dd = x.shape
    g1, b1, w1, bias1, g2, b2, w2, bias2 = params
    sd = w2.shape[1]

    n = bs * gd
    x2d = x.reshape(n, dd)                       # x.view(-1, dd)

    if tile_n is None:
        tile_n = _choose_tile_n(n)
    assert n % tile_n == 0, f"tile_n={tile_n} must divide N={n}"
    num_tiles = n // tile_n

    kernel = functools.partial(_fc_embedding_kernel, inv_n=1.0 / float(n))

    # parameters: constant index_map -> fetched once, VMEM-resident for all tiles
    def pinned(shape):
        return pl.BlockSpec(shape, lambda p, i: (0, 0))

    out2d = pl.pallas_call(
        kernel,
        out_shape=jax.ShapeDtypeStruct((n, sd), jnp.float32),
        grid_spec=pltpu.PrefetchScalarGridSpec(
            num_scalar_prefetch=0,
            grid=(3, num_tiles),                  # (phase, N-tile); tile innermost
            in_specs=[
                pl.BlockSpec((tile_n, dd), lambda p, i: (i, 0)),   # x tiles
                pinned((1, dd)),                  # gamma1
                pinned((1, dd)),                  # beta1
                pinned((dd, sd)),                 # W1
                pinned((1, sd)),                  # bias1
                pinned((1, sd)),                  # gamma2
                pinned((1, sd)),                  # beta2
                pinned((sd, sd)),                 # W2
                pinned((1, sd)),                  # bias2
            ],
            # park on block 0 during the two stats phases so no uninitialized
            # output tiles are ever written back to HBM.
            out_specs=pl.BlockSpec(
                (tile_n, sd), lambda p, i: (jnp.where(p == 2, i, 0), 0)),
            scratch_shapes=[
                pltpu.VMEM((1, dd), jnp.float32),   # sum1
                pltpu.VMEM((1, dd), jnp.float32),   # sumsq1
                pltpu.VMEM((1, sd), jnp.float32),   # sum2
                pltpu.VMEM((1, sd), jnp.float32),   # sumsq2
                pltpu.VMEM((1, dd), jnp.float32),   # scale1
                pltpu.VMEM((1, sd), jnp.float32),   # b1_eff
                pltpu.VMEM((1, sd), jnp.float32),   # scale2
                pltpu.VMEM((1, sd), jnp.float32),   # b2_eff
            ],
        ),
        compiler_params=pltpu.CompilerParams(
            # phase axis is sequential; tile axis carries the cross-tile BN-stat
            # reduction through VMEM scratch, so it must stay "arbitrary".
            dimension_semantics=("arbitrary", "arbitrary"),
            vmem_limit_bytes=32 * 1024 * 1024,
        ),
    )(x2d, g1, b1, w1, bias1, g2, b2, w2, bias2)

    return out2d.reshape(bs, gd, sd)             # x.view(bs, gd, -1)


def init_params(key, data_dim, state_dim):
    """PyTorch-default-style init. BN: gamma=1, beta=0. Linear: U(+-1/sqrt(fan_in)).
    Linear weights are stored pre-transposed as (in, out) so the kernel does x @ W."""
    k1, k2, k3, k4 = jax.random.split(key, 4)
    g1 = jnp.ones((1, data_dim), jnp.float32)
    b1 = jnp.zeros((1, data_dim), jnp.float32)

    bound1 = 1.0 / (data_dim ** 0.5)
    w1 = jax.random.uniform(k1, (data_dim, state_dim), jnp.float32,
                            minval=-bound1, maxval=bound1)
    bias1 = jax.random.uniform(k2, (1, state_dim), jnp.float32,
                               minval=-bound1, maxval=bound1)

    g2 = jnp.ones((1, state_dim), jnp.float32)
    b2 = jnp.zeros((1, state_dim), jnp.float32)

    bound2 = 1.0 / (state_dim ** 0.5)
    w2 = jax.random.uniform(k3, (state_dim, state_dim), jnp.float32,
                            minval=-bound2, maxval=bound2)
    bias2 = jax.random.uniform(k4, (1, state_dim), jnp.float32,
                               minval=-bound2, maxval=bound2)

    return (g1, b1, w1, bias1, g2, b2, w2, bias2)


def _reference(x, params):
    """Pure-JAX reference of the PyTorch forward (training-mode BatchNorm1d)."""
    g1, b1, w1, bias1, g2, b2, w2, bias2 = params
    bs, gd, dd = x.shape
    hp = jax.lax.Precision.HIGHEST
    h = x.reshape(bs * gd, dd)
    m = h.mean(0, keepdims=True)
    v = ((h - m) ** 2).mean(0, keepdims=True)
    h = (h - m) / jnp.sqrt(v + EPS) * g1 + b1
    h = jnp.dot(h, w1, precision=hp) + bias1
    h = jnp.maximum(h, 0.0)
    m = h.mean(0, keepdims=True)
    v = ((h - m) ** 2).mean(0, keepdims=True)
    h = (h - m) / jnp.sqrt(v + EPS) * g2 + b2
    h = jnp.dot(h, w2, precision=hp) + bias2
    return h.reshape(bs, gd, -1)


if __name__ == "__main__":
    # config: data_dim=32, state_dim=32, input x of shape (bs, gd, data_dim)
    bs, gd, data_dim, state_dim = 2, 8, 32, 32

    key = jax.random.PRNGKey(0)
    kx, kp = jax.random.split(key)
    x = jax.random.normal(kx, (bs, gd, data_dim), jnp.float32)
    params = init_params(kp, data_dim, state_dim)

    out = fully_connected_embedding(x, params)
    out = jax.block_until_ready(out)
    ref = _reference(x, params)
    assert out.shape == (bs, gd, state_dim)
    assert jnp.allclose(out, ref, atol=1e-4, rtol=1e-4), (
        f"max abs err {jnp.max(jnp.abs(out - ref))}")

    # Second check: exercise the multi-tile grid path (N = 512 rows, 64-row
    # tiles) so the cross-tile BN-stat reduction is actually validated.
    kx2, kp2 = jax.random.split(jax.random.PRNGKey(1))
    x2 = jax.random.normal(kx2, (4, 128, data_dim), jnp.float32)
    params2 = init_params(kp2, data_dim, state_dim)
    out2 = jax.block_until_ready(
        fully_connected_embedding(x2, params2, tile_n=64))
    ref2 = _reference(x2, params2)
    assert jnp.allclose(out2, ref2, atol=1e-4, rtol=1e-4), (
        f"max abs err {jnp.max(jnp.abs(out2 - ref2))}")

    print("KERNEL_OK")
</pallas_src>

<mosaic_0001>
module attributes {stable_mosaic.version = 11 : i64} {
  func.func @_fc_embedding_kernel(%arg0: i32, %arg1: i32, %arg2: memref<16x32xf32, #tpu.memory_space<vmem>>, %arg3: memref<1x32xf32, #tpu.memory_space<vmem>>, %arg4: memref<1x32xf32, #tpu.memory_space<vmem>>, %arg5: memref<32x32xf32, #tpu.memory_space<vmem>>, %arg6: memref<1x32xf32, #tpu.memory_space<vmem>>, %arg7: memref<1x32xf32, #tpu.memory_space<vmem>>, %arg8: memref<1x32xf32, #tpu.memory_space<vmem>>, %arg9: memref<32x32xf32, #tpu.memory_space<vmem>>, %arg10: memref<1x32xf32, #tpu.memory_space<vmem>>, %arg11: memref<16x32xf32, #tpu.memory_space<vmem>>, %arg12: memref<1x32xf32, #tpu.memory_space<vmem>>, %arg13: memref<1x32xf32, #tpu.memory_space<vmem>>, %arg14: memref<1x32xf32, #tpu.memory_space<vmem>>, %arg15: memref<1x32xf32, #tpu.memory_space<vmem>>, %arg16: memref<1x32xf32, #tpu.memory_space<vmem>>, %arg17: memref<1x32xf32, #tpu.memory_space<vmem>>, %arg18: memref<1x32xf32, #tpu.memory_space<vmem>>, %arg19: memref<1x32xf32, #tpu.memory_space<vmem>>) attributes {dimension_semantics = [#tpu.dimension_semantics<arbitrary>, #tpu.dimension_semantics<arbitrary>], iteration_bounds = array<i64: 3, 1>, scalar_prefetch = 0 : i64, scratch_operands = 8 : i64, tpu.core_type = #tpu.core_type<tc>, window_params = [{transform_indices = @transform_0, window_bounds = array<i64: 16, 32>}, {pipeline_mode = #tpu.pipeline_mode<synchronous>, transform_indices = @transform_1, window_bounds = array<i64: 1, 32>}, {pipeline_mode = #tpu.pipeline_mode<synchronous>, transform_indices = @transform_2, window_bounds = array<i64: 1, 32>}, {pipeline_mode = #tpu.pipeline_mode<synchronous>, transform_indices = @transform_3, window_bounds = array<i64: 32, 32>}, {pipeline_mode = #tpu.pipeline_mode<synchronous>, transform_indices = @transform_4, window_bounds = array<i64: 1, 32>}, {pipeline_mode = #tpu.pipeline_mode<synchronous>, transform_indices = @transform_5, window_bounds = array<i64: 1, 32>}, {pipeline_mode = #tpu.pipeline_mode<synchronous>, transform_indices = @transform_6, window_bounds = array<i64: 1, 32>}, {pipeline_mode = #tpu.pipeline_mode<synchronous>, transform_indices = @transform_7, window_bounds = array<i64: 32, 32>}, {pipeline_mode = #tpu.pipeline_mode<synchronous>, transform_indices = @transform_8, window_bounds = array<i64: 1, 32>}, {transform_indices = @transform_9, window_bounds = array<i64: 16, 32>}]} {
    %c0 = arith.constant 0 : index
    %c0_0 = arith.constant 0 : index
    %0 = vector.load %arg2[%c0, %c0_0] : memref<16x32xf32, #tpu.memory_space<vmem>>, vector<16x32xf32>
    %c0_i32 = arith.constant 0 : i32
    %1 = arith.cmpi eq, %arg0, %c0_i32 : i32
    %2 = arith.extui %1 : i1 to i32
    %c0_i32_1 = arith.constant 0 : i32
    %3 = arith.cmpi ne, %2, %c0_i32_1 : i32
    scf.if %3 {
      %c0_i32_4 = arith.constant 0 : i32
      %10 = arith.cmpi eq, %arg1, %c0_i32_4 : i32
      %11 = arith.extui %10 : i1 to i32
      %c0_i32_5 = arith.constant 0 : i32
      %12 = arith.cmpi ne, %11, %c0_i32_5 : i32
      scf.if %12 {
        %cst_17 = arith.constant 0.000000e+00 : f32
        %27 = vector.broadcast %cst_17 : f32 to vector<1x32xf32>
        %c0_18 = arith.constant 0 : index
        %c0_19 = arith.constant 0 : index
        %28 = vector.load %arg12[%c0_18, %c0_19] : memref<1x32xf32, #tpu.memory_space<vmem>>, vector<1x32xf32>
        tpu.vector_store %arg12[%c0_18, %c0_19], %27 {strides = array<i32>} : memref<1x32xf32, #tpu.memory_space<vmem>>, vector<1x32xf32>,
        %cst_20 = arith.constant 0.000000e+00 : f32
        %29 = vector.broadcast %cst_20 : f32 to vector<1x32xf32>
        %c0_21 = arith.constant 0 : index
        %c0_22 = arith.constant 0 : index
        %30 = vector.load %arg13[%c0_21, %c0_22] : memref<1x32xf32, #tpu.memory_space<vmem>>, vector<1x32xf32>
        tpu.vector_store %arg13[%c0_21, %c0_22], %29 {strides = array<i32>} : memref<1x32xf32, #tpu.memory_space<vmem>>, vector<1x32xf32>,
      } else {
      }
      %c0_6 = arith.constant 0 : index
      %c0_7 = arith.constant 0 : index
      %13 = vector.load %arg12[%c0_6, %c0_7] : memref<1x32xf32, #tpu.memory_space<vmem>>, vector<1x32xf32>
      %cst = arith.constant dense<0.000000e+00> : vector<32xf32>
      %14 = vector.multi_reduction <add>, %0, %cst [0] : vector<16x32xf32> to vector<32xf32>
      %15 = vector.shape_cast %14 : vector<32xf32> to vector<1x32xf32>
      %16 = arith.addf %13, %15 : vector<1x32xf32>
      %c0_8 = arith.constant 0 : index
      %c0_9 = arith.constant 0 : index
      %17 = vector.load %arg12[%c0_8, %c0_9] : memref<1x32xf32, #tpu.memory_space<vmem>>, vector<1x32xf32>
      tpu.vector_store %arg12[%c0_8, %c0_9], %16 {strides = array<i32>} : memref<1x32xf32, #tpu.memory_space<vmem>>, vector<1x32xf32>,
      %c0_10 = arith.constant 0 : index
      %c0_11 = arith.constant 0 : index
      %18 = vector.load %arg13[%c0_10, %c0_11] : memref<1x32xf32, #tpu.memory_space<vmem>>, vector<1x32xf32>
      %19 = arith.mulf %0, %0 : vector<16x32xf32>
      %cst_12 = arith.constant dense<0.000000e+00> : vector<32xf32>
      %20 = vector.multi_reduction <add>, %19, %cst_12 [0] : vector<16x32xf32> to vector<32xf32>
      %21 = vector.shape_cast %20 : vector<32xf32> to vector<1x32xf32>
      %22 = arith.addf %18, %21 : vector<1x32xf32>
      %c0_13 = arith.constant 0 : index
      %c0_14 = arith.constant 0 : index
      %23 = vector.load %arg13[%c0_13, %c0_14] : memref<1x32xf32, #tpu.memory_space<vmem>>, vector<1x32xf32>
      tpu.vector_store %arg13[%c0_13, %c0_14], %22 {strides = array<i32>} : memref<1x32xf32, #tpu.memory_space<vmem>>, vector<1x32xf32>,
      %c0_i32_15 = arith.constant 0 : i32
      %24 = arith.cmpi eq, %arg1, %c0_i32_15 : i32
      %25 = arith.extui %24 : i1 to i32
      %c0_i32_16 = arith.constant 0 : i32
      %26 = arith.cmpi ne, %25, %c0_i32_16 : i32
      scf.if %26 {
        %c0_17 = arith.constant 0 : index
        %c0_18 = arith.constant 0 : index
        %27 = vector.load %arg12[%c0_17, %c0_18] : memref<1x32xf32, #tpu.memory_space<vmem>>, vector<1x32xf32>
        %cst_19 = arith.constant 6.250000e-02 : f32
        %28 = vector.broadcast %cst_19 : f32 to vector<1x32xf32>
        %29 = arith.mulf %27, %28 : vector<1x32xf32>
        %c0_20 = arith.constant 0 : index
        %c0_21 = arith.constant 0 : index
        %30 = vector.load %arg13[%c0_20, %c0_21] : memref<1x32xf32, #tpu.memory_space<vmem>>, vector<1x32xf32>
        %cst_22 = arith.constant 6.250000e-02 : f32
        %31 = vector.broadcast %cst_22 : f32 to vector<1x32xf32>
        %32 = arith.mulf %30, %31 : vector<1x32xf32>
        %33 = arith.mulf %29, %29 : vector<1x32xf32>
        %34 = arith.subf %32, %33 : vector<1x32xf32>
        %c0_23 = arith.constant 0 : index
        %c0_24 = arith.constant 0 : index
        %35 = vector.load %arg3[%c0_23, %c0_24] : memref<1x32xf32, #tpu.memory_space<vmem>>, vector<1x32xf32>
        %cst_25 = arith.constant 9.99999974E-6 : f32
        %36 = vector.broadcast %cst_25 : f32 to vector<1x32xf32>
        %37 = arith.addf %34, %36 : vector<1x32xf32>
        %38 = math.rsqrt %37 : vector<1x32xf32>
        %39 = arith.mulf %35, %38 : vector<1x32xf32>
        %c0_26 = arith.constant 0 : index
        %c0_27 = arith.constant 0 : index
        %40 = vector.load %arg16[%c0_26, %c0_27] : memref<1x32xf32, #tpu.memory_space<vmem>>, vector<1x32xf32>
        tpu.vector_store %arg16[%c0_26, %c0_27], %39 {strides = array<i32>} : memref<1x32xf32, #tpu.memory_space<vmem>>, vector<1x32xf32>,
        %c0_28 = arith.constant 0 : index
        %c0_29 = arith.constant 0 : index
        %41 = vector.load %arg4[%c0_28, %c0_29] : memref<1x32xf32, #tpu.memory_space<vmem>>, vector<1x32xf32>
        %42 = arith.mulf %29, %39 : vector<1x32xf32>
        %43 = arith.subf %41, %42 : vector<1x32xf32>
        %c0_30 = arith.constant 0 : index
        %c0_31 = arith.constant 0 : index
        %44 = vector.load %arg5[%c0_30, %c0_31] : memref<32x32xf32, #tpu.memory_space<vmem>>, vector<32x32xf32>
        %cst_32 = arith.constant dense<0.000000e+00> : vector<1x32xf32>
        %45 = tpu.matmul %43, %44, %cst_32 {dimension_numbers = #tpu.dot_dimension_numbers<[1], [0], [0], [1], [0, 0, 1, 1], [], []>} : vector<1x32xf32>, vector<32x32xf32>, vector<1x32xf32> -> vector<1x32xf32>
        %c0_33 = arith.constant 0 : index
        %c0_34 = arith.constant 0 : index
        %46 = vector.load %arg6[%c0_33, %c0_34] : memref<1x32xf32, #tpu.memory_space<vmem>>, vector<1x32xf32>
        %47 = arith.addf %45, %46 : vector<1x32xf32>
        %c0_35 = arith.constant 0 : index
        %c0_36 = arith.constant 0 : index
        %48 = vector.load %arg17[%c0_35, %c0_36] : memref<1x32xf32, #tpu.memory_space<vmem>>, vector<1x32xf32>
        tpu.vector_store %arg17[%c0_35, %c0_36], %47 {strides = array<i32>} : memref<1x32xf32, #tpu.memory_space<vmem>>, vector<1x32xf32>,
      } else {
      }
    } else {
    }
    %c1_i32 = arith.constant 1 : i32
    %4 = arith.cmpi eq, %arg0, %c1_i32 : i32
    %5 = arith.extui %4 : i1 to i32
    %c0_i32_2 = arith.constant 0 : i32
    %6 = arith.cmpi ne, %5, %c0_i32_2 : i32
    scf.if %6 {
      %c0_i32_4 = arith.constant 0 : i32
      %10 = arith.cmpi eq, %arg1, %c0_i32_4 : i32
      %11 = arith.extui %10 : i1 to i32
      %c0_i32_5 = arith.constant 0 : i32
      %12 = arith.cmpi ne, %11, %c0_i32_5 : i32
      scf.if %12 {
        %cst_25 = arith.constant 0.000000e+00 : f32
        %37 = vector.broadcast %cst_25 : f32 to vector<1x32xf32>
        %c0_26 = arith.constant 0 : index
        %c0_27 = arith.constant 0 : index
        %38 = vector.load %arg14[%c0_26, %c0_27] : memref<1x32xf32, #tpu.memory_space<vmem>>, vector<1x32xf32>
        tpu.vector_store %arg14[%c0_26, %c0_27], %37 {strides = array<i32>} : memref<1x32xf32, #tpu.memory_space<vmem>>, vector<1x32xf32>,
        %cst_28 = arith.constant 0.000000e+00 : f32
        %39 = vector.broadcast %cst_28 : f32 to vector<1x32xf32>
        %c0_29 = arith.constant 0 : index
        %c0_30 = arith.constant 0 : index
        %40 = vector.load %arg15[%c0_29, %c0_30] : memref<1x32xf32, #tpu.memory_space<vmem>>, vector<1x32xf32>
        tpu.vector_store %arg15[%c0_29, %c0_30], %39 {strides = array<i32>} : memref<1x32xf32, #tpu.memory_space<vmem>>, vector<1x32xf32>,
      } else {
      }
      %c0_6 = arith.constant 0 : index
      %c0_7 = arith.constant 0 : index
      %13 = vector.load %arg16[%c0_6, %c0_7] : memref<1x32xf32, #tpu.memory_space<vmem>>, vector<1x32xf32>
      %14 = vector.broadcast %13 : vector<1x32xf32> to vector<16x32xf32>
      %15 = arith.mulf %0, %14 : vector<16x32xf32>
      %c0_8 = arith.constant 0 : index
      %c0_9 = arith.constant 0 : index
      %16 = vector.load %arg5[%c0_8, %c0_9] : memref<32x32xf32, #tpu.memory_space<vmem>>, vector<32x32xf32>
      %cst = arith.constant dense<0.000000e+00> : vector<16x32xf32>
      %17 = tpu.matmul %15, %16, %cst {dimension_numbers = #tpu.dot_dimension_numbers<[1], [0], [0], [1], [0, 0, 1, 1], [], []>} : vector<16x32xf32>, vector<32x32xf32>, vector<16x32xf32> -> vector<16x32xf32>
      %c0_10 = arith.constant 0 : index
      %c0_11 = arith.constant 0 : index
      %18 = vector.load %arg17[%c0_10, %c0_11] : memref<1x32xf32, #tpu.memory_space<vmem>>, vector<1x32xf32>
      %19 = vector.broadcast %18 : vector<1x32xf32> to vector<16x32xf32>
      %20 = arith.addf %17, %19 : vector<16x32xf32>
      %cst_12 = arith.constant 0.000000e+00 : f32
      %21 = vector.broadcast %cst_12 : f32 to vector<16x32xf32>
      %22 = arith.maximumf %20, %21 : vector<16x32xf32>
      %c0_13 = arith.constant 0 : index
      %c0_14 = arith.constant 0 : index
      %23 = vector.load %arg14[%c0_13, %c0_14] : memref<1x32xf32, #tpu.memory_space<vmem>>, vector<1x32xf32>
      %cst_15 = arith.constant dense<0.000000e+00> : vector<32xf32>
      %24 = vector.multi_reduction <add>, %22, %cst_15 [0] : vector<16x32xf32> to vector<32xf32>
      %25 = vector.shape_cast %24 : vector<32xf32> to vector<1x32xf32>
      %26 = arith.addf %23, %25 : vector<1x32xf32>
      %c0_16 = arith.constant 0 : index
      %c0_17 = arith.constant 0 : index
      %27 = vector.load %arg14[%c0_16, %c0_17] : memref<1x32xf32, #tpu.memory_space<vmem>>, vector<1x32xf32>
      tpu.vector_store %arg14[%c0_16, %c0_17], %26 {strides = array<i32>} : memref<1x32xf32, #tpu.memory_space<vmem>>, vector<1x32xf32>,
      %c0_18 = arith.constant 0 : index
      %c0_19 = arith.constant 0 : index
      %28 = vector.load %arg15[%c0_18, %c0_19] : memref<1x32xf32, #tpu.memory_space<vmem>>, vector<1x32xf32>
      %29 = arith.mulf %22, %22 : vector<16x32xf32>
      %cst_20 = arith.constant dense<0.000000e+00> : vector<32xf32>
      %30 = vector.multi_reduction <add>, %29, %cst_20 [0] : vector<16x32xf32> to vector<32xf32>
      %31 = vector.shape_cast %30 : vector<32xf32> to vector<1x32xf32>
      %32 = arith.addf %28, %31 : vector<1x32xf32>
      %c0_21 = arith.constant 0 : index
      %c0_22 = arith.constant 0 : index
      %33 = vector.load %arg15[%c0_21, %c0_22] : memref<1x32xf32, #tpu.memory_space<vmem>>, vector<1x32xf32>
      tpu.vector_store %arg15[%c0_21, %c0_22], %32 {strides = array<i32>} : memref<1x32xf32, #tpu.memory_space<vmem>>, vector<1x32xf32>,
      %c0_i32_23 = arith.constant 0 : i32
      %34 = arith.cmpi eq, %arg1, %c0_i32_23 : i32
      %35 = arith.extui %34 : i1 to i32
      %c0_i32_24 = arith.constant 0 : i32
      %36 = arith.cmpi ne, %35, %c0_i32_24 : i32
      scf.if %36 {
        %c0_25 = arith.constant 0 : index
        %c0_26 = arith.constant 0 : index
        %37 = vector.load %arg14[%c0_25, %c0_26] : memref<1x32xf32, #tpu.memory_space<vmem>>, vector<1x32xf32>
        %cst_27 = arith.constant 6.250000e-02 : f32
        %38 = vector.broadcast %cst_27 : f32 to vector<1x32xf32>
        %39 = arith.mulf %37, %38 : vector<1x32xf32>
        %c0_28 = arith.constant 0 : index
        %c0_29 = arith.constant 0 : index
        %40 = vector.load %arg15[%c0_28, %c0_29] : memref<1x32xf32, #tpu.memory_space<vmem>>, vector<1x32xf32>
        %cst_30 = arith.constant 6.250000e-02 : f32
        %41 = vector.broadcast %cst_30 : f32 to vector<1x32xf32>
        %42 = arith.mulf %40, %41 : vector<1x32xf32>
        %43 = arith.mulf %39, %39 : vector<1x32xf32>
        %44 = arith.subf %42, %43 : vector<1x32xf32>
        %c0_31 = arith.constant 0 : index
        %c0_32 = arith.constant 0 : index
        %45 = vector.load %arg7[%c0_31, %c0_32] : memref<1x32xf32, #tpu.memory_space<vmem>>, vector<1x32xf32>
        %cst_33 = arith.constant 9.99999974E-6 : f32
        %46 = vector.broadcast %cst_33 : f32 to vector<1x32xf32>
        %47 = arith.addf %44, %46 : vector<1x32xf32>
        %48 = math.rsqrt %47 : vector<1x32xf32>
        %49 = arith.mulf %45, %48 : vector<1x32xf32>
        %c0_34 = arith.constant 0 : index
        %c0_35 = arith.constant 0 : index
        %50 = vector.load %arg18[%c0_34, %c0_35] : memref<1x32xf32, #tpu.memory_space<vmem>>, vector<1x32xf32>
        tpu.vector_store %arg18[%c0_34, %c0_35], %49 {strides = array<i32>} : memref<1x32xf32, #tpu.memory_space<vmem>>, vector<1x32xf32>,
        %c0_36 = arith.constant 0 : index
        %c0_37 = arith.constant 0 : index
        %51 = vector.load %arg8[%c0_36, %c0_37] : memref<1x32xf32, #tpu.memory_space<vmem>>, vector<1x32xf32>
        %52 = arith.mulf %39, %49 : vector<1x32xf32>
        %53 = arith.subf %51, %52 : vector<1x32xf32>
        %c0_38 = arith.constant 0 : index
        %c0_39 = arith.constant 0 : index
        %54 = vector.load %arg9[%c0_38, %c0_39] : memref<32x32xf32, #tpu.memory_space<vmem>>, vector<32x32xf32>
        %cst_40 = arith.constant dense<0.000000e+00> : vector<1x32xf32>
        %55 = tpu.matmul %53, %54, %cst_40 {dimension_numbers = #tpu.dot_dimension_numbers<[1], [0], [0], [1], [0, 0, 1, 1], [], []>} : vector<1x32xf32>, vector<32x32xf32>, vector<1x32xf32> -> vector<1x32xf32>
        %c0_41 = arith.constant 0 : index
        %c0_42 = arith.constant 0 : index
        %56 = vector.load %arg10[%c0_41, %c0_42] : memref<1x32xf32, #tpu.memory_space<vmem>>, vector<1x32xf32>
        %57 = arith.addf %55, %56 : vector<1x32xf32>
        %c0_43 = arith.constant 0 : index
        %c0_44 = arith.constant 0 : index
        %58 = vector.load %arg19[%c0_43, %c0_44] : memref<1x32xf32, #tpu.memory_space<vmem>>, vector<1x32xf32>
        tpu.vector_store %arg19[%c0_43, %c0_44], %57 {strides = array<i32>} : memref<1x32xf32, #tpu.memory_space<vmem>>, vector<1x32xf32>,
      } else {
      }
    } else {
    }
    %c2_i32 = arith.constant 2 : i32
    %7 = arith.cmpi eq, %arg0, %c2_i32 : i32
    %8 = arith.extui %7 : i1 to i32
    %c0_i32_3 = arith.constant 0 : i32
    %9 = arith.cmpi ne, %8, %c0_i32_3 : i32
    scf.if %9 {
      %c0_4 = arith.constant 0 : index
      %c0_5 = arith.constant 0 : index
      %10 = vector.load %arg16[%c0_4, %c0_5] : memref<1x32xf32, #tpu.memory_space<vmem>>, vector<1x32xf32>
      %11 = vector.broadcast %10 : vector<1x32xf32> to vector<16x32xf32>
      %12 = arith.mulf %0, %11 : vector<16x32xf32>
      %c0_6 = arith.constant 0 : index
      %c0_7 = arith.constant 0 : index
      %13 = vector.load %arg5[%c0_6, %c0_7] : memref<32x32xf32, #tpu.memory_space<vmem>>, vector<32x32xf32>
      %cst = arith.constant dense<0.000000e+00> : vector<16x32xf32>
      %14 = tpu.matmul %12, %13, %cst {dimension_numbers = #tpu.dot_dimension_numbers<[1], [0], [0], [1], [0, 0, 1, 1], [], []>} : vector<16x32xf32>, vector<32x32xf32>, vector<16x32xf32> -> vector<16x32xf32>
      %c0_8 = arith.constant 0 : index
      %c0_9 = arith.constant 0 : index
      %15 = vector.load %arg17[%c0_8, %c0_9] : memref<1x32xf32, #tpu.memory_space<vmem>>, vector<1x32xf32>
      %16 = vector.broadcast %15 : vector<1x32xf32> to vector<16x32xf32>
      %17 = arith.addf %14, %16 : vector<16x32xf32>
      %cst_10 = arith.constant 0.000000e+00 : f32
      %18 = vector.broadcast %cst_10 : f32 to vector<16x32xf32>
      %19 = arith.maximumf %17, %18 : vector<16x32xf32>
      %c0_11 = arith.constant 0 : index
      %c0_12 = arith.constant 0 : index
      %20 = vector.load %arg18[%c0_11, %c0_12] : memref<1x32xf32, #tpu.memory_space<vmem>>, vector<1x32xf32>
      %21 = vector.broadcast %20 : vector<1x32xf32> to vector<16x32xf32>
      %22 = arith.mulf %19, %21 : vector<16x32xf32>
      %c0_13 = arith.constant 0 : index
      %c0_14 = arith.constant 0 : index
      %23 = vector.load %arg9[%c0_13, %c0_14] : memref<32x32xf32, #tpu.memory_space<vmem>>, vector<32x32xf32>
      %cst_15 = arith.constant dense<0.000000e+00> : vector<16x32xf32>
      %24 = tpu.matmul %22, %23, %cst_15 {dimension_numbers = #tpu.dot_dimension_numbers<[1], [0], [0], [1], [0, 0, 1, 1], [], []>} : vector<16x32xf32>, vector<32x32xf32>, vector<16x32xf32> -> vector<16x32xf32>
      %c0_16 = arith.constant 0 : index
      %c0_17 = arith.constant 0 : index
      %25 = vector.load %arg19[%c0_16, %c0_17] : memref<1x32xf32, #tpu.memory_space<vmem>>, vector<1x32xf32>
      %26 = vector.broadcast %25 : vector<1x32xf32> to vector<16x32xf32>
      %27 = arith.addf %24, %26 : vector<16x32xf32>
      %c0_18 = arith.constant 0 : index
      %c0_19 = arith.constant 0 : index
      %28 = vector.load %arg11[%c0_18, %c0_19] : memref<16x32xf32, #tpu.memory_space<vmem>>, vector<16x32xf32>
      tpu.vector_store %arg11[%c0_18, %c0_19], %27 {strides = array<i32>} : memref<16x32xf32, #tpu.memory_space<vmem>>, vector<16x32xf32>,
    } else {
    }
    return
  }
  func.func @transform_0(%arg0: i32, %arg1: i32) -> (i32, i32) {
    %c0_i32 = arith.constant 0 : i32
    %c0_i32_0 = arith.constant 0 : i32
    return %arg1, %c0_i32 : i32, i32
  }
  func.func @transform_1(%arg0: i32, %arg1: i32) -> (i32, i32) {
    %c0_i32 = arith.constant 0 : i32
    %c0_i32_0 = arith.constant 0 : i32
    %c0_i32_1 = arith.constant 0 : i32
    return %c0_i32, %c0_i32_0 : i32, i32
  }
  func.func @transform_2(%arg0: i32, %arg1: i32) -> (i32, i32) {
    %c0_i32 = arith.constant 0 : i32
    %c0_i32_0 = arith.constant 0 : i32
    %c0_i32_1 = arith.constant 0 : i32
    return %c0_i32, %c0_i32_0 : i32, i32
  }
  func.func @transform_3(%arg0: i32, %arg1: i32) -> (i32, i32) {
    %c0_i32 = arith.constant 0 : i32
    %c0_i32_0 = arith.constant 0 : i32
    %c0_i32_1 = arith.constant 0 : i32
    return %c0_i32, %c0_i32_0 : i32, i32
  }
  func.func @transform_4(%arg0: i32, %arg1: i32) -> (i32, i32) {
    %c0_i32 = arith.constant 0 : i32
    %c0_i32_0 = arith.constant 0 : i32
    %c0_i32_1 = arith.constant 0 : i32
    return %c0_i32, %c0_i32_0 : i32, i32
  }
  func.func @transform_5(%arg0: i32, %arg1: i32) -> (i32, i32) {
    %c0_i32 = arith.constant 0 : i32
    %c0_i32_0 = arith.constant 0 : i32
    %c0_i32_1 = arith.constant 0 : i32
    return %c0_i32, %c0_i32_0 : i32, i32
  }
  func.func @transform_6(%arg0: i32, %arg1: i32) -> (i32, i32) {
    %c0_i32 = arith.constant 0 : i32
    %c0_i32_0 = arith.constant 0 : i32
    %c0_i32_1 = arith.constant 0 : i32
    return %c0_i32, %c0_i32_0 : i32, i32
  }
  func.func @transform_7(%arg0: i32, %arg1: i32) -> (i32, i32) {
    %c0_i32 = arith.constant 0 : i32
    %c0_i32_0 = arith.constant 0 : i32
    %c0_i32_1 = arith.constant 0 : i32
    return %c0_i32, %c0_i32_0 : i32, i32
  }
  func.func @transform_8(%arg0: i32, %arg1: i32) -> (i32, i32) {
    %c0_i32 = arith.constant 0 : i32
    %c0_i32_0 = arith.constant 0 : i32
    %c0_i32_1 = arith.constant 0 : i32
    return %c0_i32, %c0_i32_0 : i32, i32
  }
  func.func @transform_9(%arg0: i32, %arg1: i32) -> (i32, i32) {
    %c2_i32 = arith.constant 2 : i32
    %0 = arith.cmpi eq, %arg0, %c2_i32 : i32
    %c0_i32 = arith.constant 0 : i32
    %1 = arith.select %0, %arg1, %c0_i32 : i32
    %c0_i32_0 = arith.constant 0 : i32
    %c0_i32_1 = arith.constant 0 : i32
    return %1, %c0_i32_0 : i32, i32
  }
}

</mosaic_0001>

<bundles_post_ra>
// kernel: tpu_custom_call.1
= control target key start
LH: loop header
LB: loop body
LE: loop exit
PB: predicated region body
PF: predicated region fallthrough
CT: control target
= control target key end

     0   :  { %s1743_s0 = inlined_call_operand.hbm [shape: f32[16,32], index: 0, kind: input, shape index: {}]   ;;  %s1744_s1 = inlined_call_operand.vmem [shape: f32[1,32], index: 1, kind: input, shape index: {}]   ;;  %s1745_s2 = inlined_call_operand.vmem [shape: f32[1,32], index: 2, kind: input, shape index: {}]   ;;  %s1746_s3 = inlined_call_operand.hbm [shape: f32[32,32], index: 3, kind: input, shape index: {}]   ;;  %s1747_s4 = inlined_call_operand.vmem [shape: f32[1,32], index: 4, kind: input, shape index: {}]   ;;  %s1748_s5 = inlined_call_operand.vmem [shape: f32[1,32], index: 5, kind: input, shape index: {}]   ;;  %s1749_s6 = inlined_call_operand.vmem [shape: f32[1,32], index: 6, kind: input, shape index: {}]   ;;  %s1750_s7 = inlined_call_operand.hbm [shape: f32[32,32], index: 7, kind: input, shape index: {}]   ;;  %s1751_s8 = inlined_call_operand.vmem [shape: f32[1,32], index: 8, kind: input, shape index: {}]   ;;  %s1752_s9 = inlined_call_operand.hbm [shape: f32[16,32], index: 9, kind: output, shape index: {}]  }
   0x1   :  { %1759 = sst [smem:[#allocation21_spill]] %s1752_s9 }
   0x2   :  { %14 = vsyncpa [#allocation11], 0 }
   0x3   :  { %15 = vsyncpa [#allocation14], 0 }
   0x4   :  { %16 = vsyncpa [#allocation12], 0 }
   0x5   :  { %18 = vsyncpa [#allocation12 + $0x1], 0  ;;  %s1517_s30 = smov 0   ;;  %s1519_s10 = smov 0  }
   0x6   :  { %s1521_s11 = smov 0  }
   0x7 LB: > { %1760 = sst [smem:[#allocation20_spill]] %s1447_s10  ;;  %s1756_s12 = sadd.s32 4294967295, %s1451_s11   ;;  %s1451_s11 = sphi %s1521_s11, %s24_s11   ;;  %s1447_s10 = sphi %s1519_s10, %s1774_s10   ;;  %s1443_s30 = sphi %s1517_s30, %s1773_s30  }
   0x8   : > { %p1078_p0 = scmp.ge.s32.totalorder %s1451_s11, 1  ;;  %p265_p1 = scmp.lt.s32.totalorder %s1451_s11, 4 }
   0x9   : > { %p1538_p2 = scmp.eq.s32.totalorder %s1756_s12, 0  ;;  %s1453_s16 = smov [#allocation13]  }
   0xa   : > { %p1542_p3 = pnand %p1078_p0, %p265_p1  ;;  %s299_s17 = sshll.u32 %s1453_s16, 4  ;;  %s300_s17 = int_to_ptr.vmem [resolvable:$true] %s299_s17 }
   0xb   : > { %s1761_s14 = scalar_select %p1538_p2, 1, 0 }
   0xc   : > { %s1762_s15 = scalar_select %p1542_p3, 1, 0 }
   0xd   : > { %p1242_p4 = pneg %p1542_p3  ;;  %s36_s19 = sadd.s32 1, %s1447_s10 }
   0xe   : > { %p1555_p6 = scmp.ge.s32.totalorder %s36_s19, 3  ;;  %s1307_s23 = scalar_lea.hbm %s1746_s3, 512 }
   0xf   : > { %p1550_p5 = pnand %p1538_p2, %p1242_p4  ;;  %p1308_p7 = scmp.ne.s32.totalorder %s1746_s3, %s1307_s23 }
  0x10   : > { %s1764_s20 = scalar_select %p1555_p6, 1, 0 }
  0x11   : > { %p1567_p8 = pneg %p1550_p5  ;;  %p1314_p11 = scmp.lt.u32.totalorder %s1307_s23, %s1746_s3 }
  0x13   : > { %p1310_p9 = pnand %p1567_p8, %p1308_p7 }
  0x15   : > { %p1311_p10 = pneg %p1310_p9 }
  0x17   : > { %p1316_p12 = pnand %p1314_p11, %p1311_p10 }
  0x19   : > { %1319 = shalt.err (!%p1316_p12)
}
  0x1a   : > { %s1320_s29 = scalar_lea.vmem %s300_s17, 512  ;;  %p1328_p4 = scmp.lt.s32.totalorder %s300_s17, %s300_s17 }
  0x1b   : > { %p1321_p13 = scmp.ne.s32.totalorder %s300_s17, %s1320_s29  ;;  %p1329_p2 = scmp.lt.s32.totalorder %s1320_s29, %s1320_s29 }
  0x1d   : > { %p1323_p0 = pnand %p1321_p13, %p1567_p8  ;;  %p1330_p3 = por %p1329_p2, %p1328_p4 }
  0x1f   : > { %p1324_p1 = pneg %p1323_p0 }
  0x21   : > { %p1331_p6 = pnand %p1330_p3, %p1324_p1 }
  0x23   : > { %1334 = shalt.err (!%p1331_p6)
}
  0x24   : > { %s1454_s16 = smov 128   ;;  %s1455_s21 = smov 8  }
  0x25   : > { %1248 = dma.hbm_to_vmem [thread:$0]  (!%p1550_p5), %s1746_s3, 512, %s300_s17, [#allocation14], %s1454_s16, %s1454_s16, %s1455_s21  }
  0x26   : > { %p1766_p7 = scmp.ne.s32.totalorder %s1764_s20, 0  ;;  %s1456_s24 = smov [#allocation10]  }
  0x27   : > { %s280_s25 = sshll.u32 %s1456_s24, 4  ;;  %s1457_s27 = smov [#allocation15]   ;;  %s281_s25 = int_to_ptr.vmem [resolvable:$true] %s280_s25 }
  0x28   : > { %s1776_s19 = smov (%p1766_p7, %s36_s19), 0  ;;  %s321_s28 = sshll.u32 %s1457_s27, 4  ;;  %s322_s28 = int_to_ptr.vmem [resolvable:$true] %s321_s28 }
  0x29   : > { %s1335_s12 = scalar_lea.hbm %s1743_s0, 256 }
  0x2a   : > { %p1336_p2 = scmp.ne.s32.totalorder %s1743_s0, %s1335_s12  ;;  %p1342_p9 = scmp.lt.u32.totalorder %s1335_s12, %s1743_s0 }
  0x2c   : > { %p1338_p3 = pnand %p1336_p2, %p1567_p8 }
  0x2e   : > { %p1339_p6 = pneg %p1338_p3 }
  0x30   : > { %p1344_p10 = pnand %p1342_p9, %p1339_p6 }
  0x32   : > { %1347 = shalt.err (!%p1344_p10)
}
  0x33   : > { %s1348_s22 = scalar_lea.vmem %s281_s25, 256  ;;  %p1356_p0 = scmp.lt.s32.totalorder %s281_s25, %s281_s25 }
  0x34   : > { %p1349_p11 = scmp.ne.s32.totalorder %s281_s25, %s1348_s22  ;;  %p1357_p1 = scmp.lt.s32.totalorder %s1348_s22, %s1348_s22 }
  0x36   : > { %p1351_p12 = pnand %p1349_p11, %p1567_p8  ;;  %p1358_p4 = por %p1357_p1, %p1356_p0 }
  0x38   : > { %p1352_p13 = pneg %p1351_p12 }
  0x3a   : > { %p1359_p7 = pnand %p1358_p4, %p1352_p13 }
  0x3c   : > { %1362 = shalt.err (!%p1359_p7)
}
  0x3d   : > { %1245 = dma.hbm_to_vmem [thread:$0]  (!%p1550_p5), %s1743_s0, 256, %s281_s25, [#allocation11], %s1454_s16, %s1454_s16, %s1455_s21  }
  0x3e   : > { %s1363_s23 = scalar_lea.hbm %s1750_s7, 512 }
  0x3f   : > { %p1364_p2 = scmp.ne.s32.totalorder %s1750_s7, %s1363_s23  ;;  %p1370_p9 = scmp.lt.u32.totalorder %s1363_s23, %s1750_s7 }
  0x41   : > { %p1366_p3 = pnand %p1364_p2, %p1567_p8 }
  0x43   : > { %p1367_p6 = pneg %p1366_p3 }
  0x45   : > { %p1372_p10 = pnand %p1370_p9, %p1367_p6 }
  0x47   : > { %1375 = shalt.err (!%p1372_p10)
}
  0x48   : > { %s1376_s20 = scalar_lea.vmem %s322_s28, 512  ;;  %p1384_p0 = scmp.lt.s32.totalorder %s322_s28, %s322_s28 }
  0x49   : > { %p1377_p11 = scmp.ne.s32.totalorder %s322_s28, %s1376_s20  ;;  %p1385_p1 = scmp.lt.s32.totalorder %s1376_s20, %s1376_s20 }
  0x4b   : > { %p1379_p12 = pnand %p1377_p11, %p1567_p8  ;;  %p1386_p4 = por %p1385_p1, %p1384_p0 }
  0x4d   : > { %p1380_p13 = pneg %p1379_p12 }
  0x4f   : > { %p1387_p7 = pnand %p1386_p4, %p1380_p13 }
  0x51   : > { %1390 = shalt.err (!%p1387_p7)
}
  0x52   : > { %1251 = dma.hbm_to_vmem [thread:$0]  (!%p1550_p5), %s1750_s7, 512, %s322_s28, [#allocation14], %s1454_s16, %s1454_s16, %s1455_s21  }
  0x53   : > { %p1767_p2 = scmp.ne.s32.totalorder %s1762_s15, 0 }
  0x54   : > { %p1768_p8 = scmp.ne.s32.totalorder (!%p1767_p2), %s1761_s14, 0 }
  0x55   : > { %340 = sbr.rel (%p1767_p2) target bundleno = 1336 (0x538), region = 56 }
  0x5c   : > { %1430 = dma.done.wait (%p1768_p8), [#allocation11], 256  }
  0x5d   : > { %1432 = vsyncadd (%p1768_p8), [#allocation11], 4294967040 }
  0x5e   : > { %1434 = dma.done.wait (%p1768_p8), [#allocation14], 1024  }
  0x5f   : > { %1436 = vsyncadd (%p1768_p8), [#allocation14], 4294966272  ;;  %v1642_v0 = vld [vmem:[#allocation10] sm:$0xff]  ;;  %v1644_v1 = vld [vmem:[#allocation10 + $0x8] sm:$0xff]  ;;  %p1086_p5 = scmp.ne.s32.totalorder %s1443_s30, 0 }
  0x60   : > { %v441_v2 = vld [vmem:[#allocation13] sm:$0xff] (!%p1086_p5)  ;;  %v442_v3 = vld [vmem:[#allocation13 + $0x8] sm:$0xff] (!%p1086_p5)  ;;  %v443_v4 = vld [vmem:[#allocation13 + $0x10] sm:$0xff] (!%p1086_p5)  ;;  %vm393_vm0 = vcmask (!%p1086_p5), 253952   ;;  %v411_v5 = vmul.f32 (!%p1086_p5), %v1642_v0, %v1642_v0  ;;  %v1458_v6 = vmov (!%p1086_p5), 0.0|0.0   ;;  %v1459_v9 = vmov (!%p1086_p5), 0.0  }
  0x61   : > { %388 = sbr.rel (%p1086_p5) target bundleno = 364 (0x16c), region = 72  ;;  %1190 = vmatprep.subr.bf16.mxu0 (!%p1086_p5), %v1458_v6  ;;  %v1191_v7 = vpack.c.bf16 (!%p1086_p5), %v442_v3, %v441_v2  ;;  %v444_v8 = vld [vmem:[#allocation13 + $0x18] sm:$0xff] (!%p1086_p5)  ;;  %394 = vst.msk [vmem:[#allocation2] sm:$0x1] (!%p1086_p5), %vm393_vm0, %v1459_v9  ;;  %395 = vst.msk [vmem:[#allocation3] sm:$0x1] (!%p1086_p5), %vm393_vm0, %v1459_v9  ;;  %v412_v10 = vmul.f32 (!%p1086_p5), %v1644_v1, %v1644_v1 }
  0x62   : > { %vm397_vm1 = vcmask (!%p1086_p5), 261120   ;;  %vm1460_vm2 = vmmov (!%p1086_p5), 0   ;;  %v1194_v14 = vpack.c.bf16 (!%p1086_p5), %v444_v8, %v443_v4  ;;  %v433_v41 = vld [vmem:[%s1744_s1] sm:$0x1] (!%p1086_p5) }
  0x63   : > { %1143 = vmatprep.mubr.msk.f32.mxu0 (!%p1086_p5), %vm1460_vm2, %v1459_v9  ;;  %v398_v11 = vsel (!%p1086_p5), %vm397_vm1, %v1642_v0, 0.0  ;;  %v399_v12 = vsel (!%p1086_p5), %vm397_vm1, %v1644_v1, 0.0  ;;  %v413_v13 = vsel (!%p1086_p5), %vm397_vm1, %v411_v5, 0.0  ;;  %1192 = vmatpush3.bf16.msra.mxu0 (!%p1086_p5), %v1191_v7  ;;  %v414_v16 = vsel (!%p1086_p5), %vm397_vm1, %v412_v10, 0.0  ;;  %v438_v44 = vld [vmem:[%s1745_s2] sm:$0x1] (!%p1086_p5) }
  0x64   : > { %v400_v15 = vadd.f32 (!%p1086_p5), %v399_v12, %v398_v11  ;;  %1193 = vmatprep.subr.bf16.mxu0 (!%p1086_p5), %v1458_v6  ;;  %v415_v17 = vadd.f32 (!%p1086_p5), %v414_v16, %v413_v13  ;;  %v445_v47 = vld [vmem:[%s1747_s4] sm:$0x1] (!%p1086_p5) }
  0x66   : > { %v401_v18 = vrot.slane (!%p1086_p5), %v400_v15, 4  ;;  %v416_v19 = vrot.slane (!%p1086_p5), %v415_v17, 4 }
  0x67   : > { %1195 = vmatpush3.bf16.msra.mxu0 (!%p1086_p5), %v1194_v14 }
  0x68   : > { %v402_v20 = vadd.f32 %v401_v18, %v400_v15  ;;  %v417_v21 = vadd.f32 %v416_v19, %v415_v17  ;;  %v396_v27 = vld [vmem:[#allocation2] sm:$0x1]  ;;  %v410_v30 = vld [vmem:[#allocation3] sm:$0x1] }
  0x6a   : > { %v403_v22 = vrot.slane %v402_v20, 2  ;;  %v418_v23 = vrot.slane %v417_v21, 2 }
  0x6c   : > { %v404_v24 = vadd.f32 %v403_v22, %v402_v20  ;;  %v419_v25 = vadd.f32 %v418_v23, %v417_v21 }
  0x6e   : > { %v405_v26 = vrot.slane %v404_v24, 1  ;;  %v420_v28 = vrot.slane %v419_v25, 1 }
  0x70   : > { %v406_v29 = vadd.f32 %v405_v26, %v404_v24  ;;  %v421_v31 = vadd.f32 %v420_v28, %v419_v25 }
  0x72   : > { %v407_v32 = vadd.f32 %v406_v29, %v396_v27  ;;  %v422_v33 = vadd.f32 %v421_v31, %v410_v30 }
  0x74   : > { %409 = vst.msk [vmem:[#allocation2] sm:$0x1] %vm393_vm0, %v407_v32  ;;  %423 = vst.msk [vmem:[#allocation3] sm:$0x1] %vm393_vm0, %v422_v33 }
  0x7b   : > { %v427_v34 = vld [vmem:[#allocation2] sm:$0x1]  ;;  %v429_v36 = vld [vmem:[#allocation3] sm:$0x1] }
  0x7c   : > { %v428_v35 = vmul.f32 0.0625, %v427_v34  ;;  %v430_v37 = vmul.f32 0.0625, %v429_v36 }
  0x7e   : > { %v431_v38 = vmul.f32 %v428_v35, %v428_v35 }
  0x80   : > { %v432_v39 = vsub.f32 %v430_v37, %v431_v38 }
  0x82   : > { %v434_v40 = vadd.f32 1e-05, %v432_v39 }
  0x84   : > { %1303 = vrsqrt.f32 %v434_v40 }
  0x8e   : > { %v1304_v42 = vpop.eup %1303 }
  0x8f   : > { %v436_v43 = vmul.f32 %v1304_v42, %v433_v41 }
  0x91   : > { %437 = vst.msk [vmem:[#allocation6] sm:$0x1] %vm393_vm0, %v436_v43  ;;  %v439_v45 = vmul.f32 %v436_v43, %v428_v35 }
  0x93   : > { %v440_v46 = vsub.f32 %v438_v44, %v439_v45 }
  0x95   : > { %1144 = vmatmul.mubr.msk.f32.vlgmr.msra.gmra.mrb[0].mxu0 %vm397_vm1, %v440_v46 }
 0x168   : > { %v515_v48 = vpop.f32.mrb[0].mxu0 }
 0x169   : > { %v516_v49 = vadd.f32 %v515_v48, %v445_v47  ;;  %v1145_v50 = vpop.f32.mrb[1].mxu0 }
 0x16b   : > { %519 = vst.msk [vmem:[#allocation7] sm:$0x1] %vm393_vm0, %v516_v49 }
 0x16c PF: > { %p1088_p3 = scmp.ne.s32.totalorder %s1443_s30, 1 }
 0x16d   : > { %v540_v51 = vld [vmem:[#allocation13] sm:$0xff] (!%p1088_p3)  ;;  %v541_v52 = vld [vmem:[#allocation13 + $0x8] sm:$0xff] (!%p1088_p3)  ;;  %v542_v53 = vld [vmem:[#allocation13 + $0x10] sm:$0xff] (!%p1088_p3)  ;;  %vm551_vm3 = vcmask (!%p1088_p3), 261120   ;;  %vm528_vm4 = vcmask (!%p1088_p3), 253952   ;;  %v1461_v60 = vmov (!%p1088_p3), 0.0  }
 0x16e   : > { %523 = sbr.rel (%p1088_p3) target bundleno = 858 (0x35a), region = 84  ;;  %v1196_v54 = vpack.c.bf16 (!%p1088_p3), %v541_v52, %v540_v51  ;;  %v543_v55 = vld [vmem:[#allocation13 + $0x18] sm:$0xff] (!%p1088_p3)  ;;  %v1089_v56 = vld [vmem:[#allocation6] ss:$0 sm:$0xff] (!%p1088_p3)  ;;  %529 = vst.msk [vmem:[#allocation4] sm:$0x1] (!%p1088_p3), %vm528_vm4, %v1461_v60 }
 0x16f   : > { %v1200_v57 = vpack.c.bf16 (!%p1088_p3), %v543_v55, %v542_v53  ;;  %v538_v58 = vmul.f32 (!%p1088_p3), %v1089_v56, %v1642_v0  ;;  %v539_v59 = vmul.f32 (!%p1088_p3), %v1089_v56, %v1644_v1  ;;  %530 = vst.msk [vmem:[#allocation5] sm:$0x1] (!%p1088_p3), %vm528_vm4, %v1461_v60  ;;  %v679_v61 = vld [vmem:[#allocation15] sm:$0xff] (!%p1088_p3)  ;;  %v680_v62 = vld [vmem:[#allocation15 + $0x8] sm:$0xff] (!%p1088_p3)  ;;  %v681_v63 = vld [vmem:[#allocation15 + $0x10] sm:$0xff] (!%p1088_p3)  ;;  %v1462_v2 = vmov (!%p1088_p3), 0.0|0.0  }
 0x170   : > { %1197 = vmatprep.subr.bf16.mxu0 (!%p1088_p3), %v1196_v54  ;;  %1204 = vmatprep.subr.bf16.mxu1 (!%p1088_p3), %v1462_v2  ;;  %v1205_v3 = vpack.c.bf16 (!%p1088_p3), %v680_v62, %v679_v61  ;;  %v682_v4 = vld [vmem:[#allocation15 + $0x18] sm:$0xff] (!%p1088_p3)  ;;  %vm1463_vm5 = vmmov (!%p1088_p3), 0   ;;  %v671_v44 = vld [vmem:[%s1748_s5] sm:$0x1] (!%p1088_p3) }
 0x171   : > { %1199 = vmatpush3.bf16.msra.mxu0 (!%p1088_p3), %v1196_v54  ;;  %1154 = vmatprep.mubr.msk.f32.mxu0 (!%p1088_p3), %vm551_vm3, %v538_v58  ;;  %v1208_v5 = vpack.c.bf16 (!%p1088_p3), %v682_v4, %v681_v63  ;;  %v676_v47 = vld [vmem:[%s1749_s6] sm:$0x1] (!%p1088_p3) }
 0x172   : > { %1201 = vmatprep.subr.bf16.mxu0 (!%p1088_p3), %v1200_v57  ;;  %1206 = vmatpush3.bf16.msra.mxu1 (!%p1088_p3), %v1205_v3  ;;  %v1090_v6 = vld [vmem:[#allocation7] ss:$0 sm:$0xff] (!%p1088_p3)  ;;  %v683_v50 = vld [vmem:[%s1751_s8] sm:$0x1] (!%p1088_p3) }
 0x173   : > { %1207 = vmatprep.subr.bf16.mxu1 (!%p1088_p3), %v1462_v2  ;;  %1165 = vmatprep.mubr.msk.f32.mxu1 (!%p1088_p3), %vm1463_vm5, %v1461_v60 }
 0x175   : > { %1203 = vmatpush3.bf16.msra.mxu0 %v1200_v57  ;;  %v635_v30 = vld [vmem:[#allocation4] sm:$0x1] }
 0x176   : > { %1209 = vmatpush3.bf16.msra.mxu1 %v1208_v5  ;;  %v648_v33 = vld [vmem:[#allocation5] sm:$0x1] }
 0x178   : > { %1155 = vmatmul.mubr.msk.f32.vlgmr.msra.gmra.mrb[0].mxu0 %vm551_vm3, %v539_v59 }
 0x24b   : > { %v1156_v7 = vpop.f32.mrb[0].mxu0 }
 0x24c   : > { %v630_v8 = vadd.f32 %v1156_v7, %v1090_v6  ;;  %v624_v9 = vpop.f32.mrb[1].mxu0 }
 0x24d   : > { %v625_v10 = vadd.f32 %v1090_v6, %v624_v9 }
 0x24e   : > { %v634_v11 = vmax.f32 %v630_v8, 0.0 }
 0x24f   : > { %v633_v12 = vmax.f32 %v625_v10, 0.0 }
 0x250   : > { %v637_v13 = vsel %vm551_vm3, %v634_v11, 0.0  ;;  %v650_v14 = vmul.f32 %v634_v11, %v634_v11 }
 0x251   : > { %v636_v15 = vsel %vm551_vm3, %v633_v12, 0.0  ;;  %v649_v16 = vmul.f32 %v633_v12, %v633_v12 }
 0x252   : > { %v652_v17 = vsel %vm551_vm3, %v650_v14, 0.0  ;;  %v638_v18 = vadd.f32 %v637_v13, %v636_v15 }
 0x253   : > { %v651_v19 = vsel %vm551_vm3, %v649_v16, 0.0 }
 0x254   : > { %v639_v20 = vrot.slane %v638_v18, 4  ;;  %v653_v21 = vadd.f32 %v652_v17, %v651_v19 }
 0x256   : > { %v640_v22 = vadd.f32 %v639_v20, %v638_v18  ;;  %v654_v23 = vrot.slane %v653_v21, 4 }
 0x258   : > { %v641_v24 = vrot.slane %v640_v22, 2  ;;  %v655_v25 = vadd.f32 %v654_v23, %v653_v21 }
 0x25a   : > { %v642_v26 = vadd.f32 %v641_v24, %v640_v22  ;;  %v656_v27 = vrot.slane %v655_v25, 2 }
 0x25c   : > { %v643_v28 = vrot.slane %v642_v26, 1  ;;  %v657_v29 = vadd.f32 %v656_v27, %v655_v25 }
 0x25e   : > { %v644_v31 = vadd.f32 %v643_v28, %v642_v26  ;;  %v658_v32 = vrot.slane %v657_v29, 1 }
 0x260   : > { %v659_v34 = vadd.f32 %v658_v32, %v657_v29  ;;  %v645_v35 = vadd.f32 %v644_v31, %v635_v30 }
 0x262   : > { %647 = vst.msk [vmem:[#allocation4] sm:$0x1] %vm528_vm4, %v645_v35  ;;  %v660_v36 = vadd.f32 %v659_v34, %v648_v33 }
 0x264   : > { %661 = vst.msk [vmem:[#allocation5] sm:$0x1] %vm528_vm4, %v660_v36 }
 0x269   : > { %v665_v37 = vld [vmem:[#allocation4] sm:$0x1] }
 0x26a   : > { %v666_v38 = vmul.f32 0.0625, %v665_v37 }
 0x26b   : > { %v667_v39 = vld [vmem:[#allocation5] sm:$0x1] }
 0x26c   : > { %v668_v40 = vmul.f32 0.0625, %v667_v39  ;;  %v669_v41 = vmul.f32 %v666_v38, %v666_v38 }
 0x26e   : > { %v670_v42 = vsub.f32 %v668_v40, %v669_v41 }
 0x270   : > { %v672_v43 = vadd.f32 1e-05, %v670_v42 }
 0x272   : > { %1305 = vrsqrt.f32 %v672_v43 }
 0x27c   : > { %v1306_v45 = vpop.eup %1305 }
 0x27d   : > { %v674_v46 = vmul.f32 %v1306_v45, %v671_v44 }
 0x27f   : > { %675 = vst.msk [vmem:[#allocation8] sm:$0x1] %vm528_vm4, %v674_v46  ;;  %v677_v48 = vmul.f32 %v674_v46, %v666_v38 }
 0x281   : > { %v678_v49 = vsub.f32 %v676_v47, %v677_v48 }
 0x283   : > { %1166 = vmatmul.mubr.msk.f32.vlgmr.msra.gmra.mrb[0].mxu1 %vm551_vm3, %v678_v49 }
 0x356   : > { %v753_v51 = vpop.f32.mrb[0].mxu1 }
 0x357   : > { %v754_v52 = vadd.f32 %v753_v51, %v683_v50  ;;  %v1167_v53 = vpop.f32.mrb[1].mxu1 }
 0x359   : > { %757 = vst.msk [vmem:[#allocation9] sm:$0x1] %vm528_vm4, %v754_v52 }
 0x35a PF: > { %p1094_p6 = scmp.ne.s32.totalorder %s1443_s30, 2 }
 0x35b   : > { %v771_v54 = vld [vmem:[#allocation13] sm:$0xff] (!%p1094_p6)  ;;  %v772_v55 = vld [vmem:[#allocation13 + $0x8] sm:$0xff] (!%p1094_p6)  ;;  %v773_v56 = vld [vmem:[#allocation13 + $0x10] sm:$0xff] (!%p1094_p6)  ;;  %vm782_vm6 = vcmask (!%p1094_p6), 261120  }
 0x35c   : > { %761 = sbr.rel (%p1094_p6) target bundleno = 1306 (0x51a), region = 96  ;;  %v1210_v57 = vpack.c.bf16 (!%p1094_p6), %v772_v55, %v771_v54  ;;  %v774_v58 = vld [vmem:[#allocation13 + $0x18] sm:$0xff] (!%p1094_p6)  ;;  %v1095_v59 = vld [vmem:[#allocation6] ss:$0 sm:$0xff] (!%p1094_p6)  ;;  %v875_v63 = vld [vmem:[#allocation15] sm:$0xff] (!%p1094_p6) }
 0x35d   : > { %v1214_v60 = vpack.c.bf16 (!%p1094_p6), %v774_v58, %v773_v56  ;;  %v769_v61 = vmul.f32 (!%p1094_p6), %v1095_v59, %v1642_v0  ;;  %v770_v62 = vmul.f32 (!%p1094_p6), %v1095_v59, %v1644_v1  ;;  %v876_v2 = vld [vmem:[#allocation15 + $0x8] sm:$0xff] (!%p1094_p6)  ;;  %v877_v4 = vld [vmem:[#allocation15 + $0x10] sm:$0xff] (!%p1094_p6)  ;;  %v878_v5 = vld [vmem:[#allocation15 + $0x18] sm:$0xff] (!%p1094_p6) }
 0x35e   : > { %1211 = vmatprep.subr.bf16.mxu0 (!%p1094_p6), %v1210_v57  ;;  %v1218_v3 = vpack.c.bf16 (!%p1094_p6), %v876_v2, %v875_v63  ;;  %v1222_v6 = vpack.c.bf16 (!%p1094_p6), %v878_v5, %v877_v4  ;;  %v1096_v0 = vld [vmem:[#allocation7] ss:$0 sm:$0xff] (!%p1094_p6)  ;;  %v1099_v1 = vld [vmem:[#allocation8] ss:$0 sm:$0xff] (!%p1094_p6) }
 0x35f   : > { %1213 = vmatpush3.bf16.msra.mxu0 (!%p1094_p6), %v1210_v57  ;;  %1176 = vmatprep.mubr.msk.f32.mxu0 (!%p1094_p6), %vm782_vm6, %v769_v61 }
 0x360   : > { %1215 = vmatprep.subr.bf16.mxu0 (!%p1094_p6), %v1214_v60  ;;  %1219 = vmatprep.subr.bf16.mxu1 (!%p1094_p6), %v1218_v3  ;;  %v1100_v15 = vld [vmem:[#allocation9] ss:$0 sm:$0xff] (!%p1094_p6) }
 0x361   : > { %1221 = vmatpush3.bf16.msra.mxu1 (!%p1094_p6), %v1218_v3 }
 0x362   : > { %1223 = vmatprep.subr.bf16.mxu1 (!%p1094_p6), %v1222_v6 }
 0x363   : > { %1217 = vmatpush3.bf16.msra.mxu0 %v1214_v60 }
 0x365   : > { %1225 = vmatpush3.bf16.msra.mxu1 %v1222_v6 }
 0x366   : > { %1177 = vmatmul.mubr.msk.f32.vlgmr.msra.gmra.mrb[0].mxu0 %vm782_vm6, %v770_v62 }
 0x439   : > { %v1178_v7 = vpop.f32.mrb[0].mxu0 }
 0x43a   : > { %v861_v8 = vadd.f32 %v1178_v7, %v1096_v0  ;;  %v855_v9 = vpop.f32.mrb[1].mxu0 }
 0x43b   : > { %v856_v10 = vadd.f32 %v1096_v0, %v855_v9 }
 0x43c   : > { %v865_v11 = vmax.f32 %v861_v8, 0.0 }
 0x43d   : > { %v864_v12 = vmax.f32 %v856_v10, 0.0 }
 0x43e   : > { %v874_v14 = vmul.f32 %v1099_v1, %v865_v11 }
 0x43f   : > { %v873_v13 = vmul.f32 %v1099_v1, %v864_v12 }
 0x441   : > { %1187 = vmatprep.mubr.msk.f32.mxu1 %vm782_vm6, %v873_v13 }
 0x442   : > { %1188 = vmatmul.mubr.msk.f32.vlgmr.msra.gmra.mrb[0].mxu1 %vm782_vm6, %v874_v14 }
 0x515   : > { %v1189_v16 = vpop.f32.mrb[0].mxu1 }
 0x516   : > { %v964_v17 = vadd.f32 %v1189_v16, %v1100_v15  ;;  %v958_v18 = vpop.f32.mrb[1].mxu1 }
 0x517   : > { %v959_v19 = vadd.f32 %v1100_v15, %v958_v18 }
 0x518   : > { %968 = vst.msk [vmem:[#allocation16 + $0x8] sm:$0xff] %vm782_vm6, %v964_v17 }
 0x519   : > { %967 = vst.msk [vmem:[#allocation16] sm:$0xff] %vm782_vm6, %v959_v19 }
 0x51a PF: > { %s1769_s30 = sadd.s32 4294967295, %s1451_s11   ;;  %s1464_s27 = smov [#allocation16]  }
 0x51b   : > { %p1709_p9 = scmp.eq.s32.totalorder %s1769_s30, 2  ;;  %s985_s29 = sshll.u32 %s1464_s27, 4  ;;  %s986_s29 = int_to_ptr.vmem [resolvable:$true] %s985_s29 }
 0x51c   : > { %s1391_s17 = scalar_lea.vmem %s986_s29, 256  ;;  %s1397_s20 = scalar_lea.vmem %s986_s29, 512 }
 0x51d   : > { %p1392_p10 = scmp.ne.s32.totalorder %s986_s29, %s1391_s17  ;;  %p1398_p13 = scmp.lt.s32.totalorder %s986_s29, %s986_s29 }
 0x51e   : > { %p1399_p0 = scmp.lt.s32.totalorder %s1397_s20, %s1391_s17 }
 0x51f   : > { %p1393_p11 = pnand %p1392_p10, %p1709_p9 }
 0x520   : > { %p1400_p1 = por %p1399_p0, %p1398_p13 }
 0x521   : > { %p1394_p12 = pneg %p1393_p11 }
 0x523   : > { %p1401_p4 = pnand %p1400_p1, %p1394_p12 }
 0x525   : > { %1404 = shalt.err (!%p1401_p4)
}
 0x526   : > { %s1771_s14 = sld [smem:[#allocation21_spill]] }
 0x52c   : > { %s1405_s15 = scalar_lea.hbm %s1771_s14, 256 }
 0x52d   : > { %p1406_p7 = scmp.ne.s32.totalorder %s1771_s14, %s1405_s15  ;;  %p1411_p5 = scmp.lt.u32.totalorder %s1405_s15, %s1771_s14 }
 0x52f   : > { %p1407_p2 = pnand %p1406_p7, %p1709_p9 }
 0x531   : > { %p1408_p8 = pneg %p1407_p2 }
 0x533   : > { %p1413_p3 = pnand %p1411_p5, %p1408_p8 }
 0x535   : > { %1416 = shalt.err (!%p1413_p3)
}
 0x536   : > { %s1465_s28 = smov 128   ;;  %s1466_s9 = smov 8  }
 0x537   : > { %1239 = dma.vmem_to_hbm [thread:$0]  (%p1709_p9), %s986_s29, 256, %s1771_s14, [#allocation12], %s1465_s28, %s1465_s28, %s1466_s9  }
 0x538 PF: > { %p1263_p6 = scmp.ge.s32.totalorder %s1451_s11, 2  ;;  %s1772_s13 = sadd.s32 4294967294, %s1451_s11  }
 0x539   : > { %p1264_p10 = scmp.eq.s32.totalorder %s1772_s13, 2 }
 0x53b   : > { %p1253_p11 = pnand %p1264_p10, %p1263_p6 }
 0x53d   : > { %1438 = dma.done.wait (!%p1253_p11), [#allocation12], 256  }
 0x53e   : > { %1440 = vsyncadd (!%p1253_p11), [#allocation12], 4294967040  ;;  %s24_s11 = sadd.s32 1, %s1451_s11   ;;  %s1773_s30 = sld [smem:[#allocation20_spill]] }
 0x53f   : > { %p21_p12 = scmp.ge.s32.totalorder %s24_s11, 5   ;;  %s1774_s10 = smov %s1776_s19 }
 0x541   :  { %23 = sbr.rel (!%p21_p12) target bundleno = 7 (0x7), region = 130 }
 0x548   :  { %1006 = vsyncpa [#allocation11], 1 }
 0x549   :  { %1008 = vsyncpa [#allocation11 + $0x1], 1 }
 0x54a   :  { %1009 = vsyncpa [#allocation14], 1 }
 0x54b   :  { %1010 = vsyncpa [#allocation12], 1 }
 0x54c   :  { %1012 = vsyncpa [#allocation12 + $0x1], 1 }

</bundles_post_ra>
